<compile_context>
chip_gen: v7x
topology: tpu7x:2x2x1
jax: 0.10.0
libtpu: 0.0.40
codegen_flags: <defaults>
</compile_context>

<pallas_src>
import functools

import jax
import jax.numpy as jnp
from jax.experimental import pallas as pl
from jax.experimental.pallas import tpu as pltpu

IN_CHANNEL = 4
CHANNEL = 8
BATCH = 2
LENGTH = 16
EPS = 1e-5
INV_SQRT2 = 0.7071067811865476
LANE = 128
SUBLANE = 8


def _round_up(a, m):
    return (a + m - 1) // m * m


# ------------------------------ kernel ------------------------------------ #

def _gelu(h):
    # exact (erf-based) GELU, matching torch.nn.GELU() default
    return 0.5 * h * (1.0 + jax.lax.erf(h * INV_SQRT2))


def basic_block_kernel(length, n_valid,
                       x_ref,                    # (Cin_p, Npad)
                       w1r_ref, g1r_ref, be1r_ref,   # (2Co,3Cin_p),(2Co,1),(2Co,1)
                       w2_ref, g2_ref, be2_ref,      # (Co,3Co),(Co,1),(Co,1)
                       o_ref):                   # (Co, Npad)
    x = x_ref[...]
    npad = x.shape[-1]
    co = w2_ref.shape[0]
    inv_n = 1.0 / n_valid

    # hoisted index math / boundary masks (shared by both convs and all BNs)
    lane = jax.lax.broadcasted_iota(jnp.int32, (1, npad), 1)
    pos = lane % length                   # position within a sequence
    lane_valid = lane < n_valid           # real (non-pad) lanes
    mask_l = pos >= 1                     # tap d=-1 reads x[l-1]
    mask_r = pos < (length - 1)           # tap d=+1 reads x[l+1]

    def stack_taps(h):
        # Build the (3*C, Npad) RHS for a fused k=3 'same' conv:
        # rows [x[l-1]; x[l]; x[l+1]] with per-sequence boundary masking.
        left = jnp.where(mask_l, pltpu.roll(h, shift=1, axis=1), 0.0)
        right = jnp.where(mask_r, pltpu.roll(h, shift=npad - 1, axis=1), 0.0)
        return jnp.concatenate([left, h, right], axis=0)

    def bn_train(h, gamma, beta):
        # training-mode BatchNorm1d over the valid lanes, single lane
        # reduction for both sum and sum-of-squares.
        hm = jnp.where(lane_valid, h, 0.0)
        s = jnp.sum(jnp.concatenate([hm, hm * hm], axis=0),
                    axis=1, keepdims=True)
        c = h.shape[0]
        mean = s[:c] * inv_n
        var = s[c:] * inv_n - mean * mean
        return (h - mean) * jax.lax.rsqrt(var + EPS) * gamma + beta

    # fused conv1 (3 taps) + resize 1x1 shortcut: single MXU push
    #   (2Co, 3Cin_p) @ (3Cin_p, Npad) -> rows [conv1 out ; resize out]
    hr = jnp.dot(w1r_ref[...], stack_taps(x), preferred_element_type=jnp.float32)

    # fused BN (norm1 + resize-BN): one lane reduction for both
    hr = bn_train(hr, g1r_ref[...], be1r_ref[...])
    h = _gelu(hr[:co])                    # main path after norm1 + gelu
    r = hr[co:]                           # normalized shortcut

    # conv2: 3 taps fused into one matmul, then norm2
    h = jnp.dot(w2_ref[...], stack_taps(h), preferred_element_type=jnp.float32)
    h = bn_train(h, g2_ref[...], be2_ref[...])

    # residual add + final gelu (lane-dense, unmasked store)
    o_ref[...] = _gelu(h + r)


# ------------------------------ wrapper ------------------------------------ #

def basic_block_forward(x, params):
    b, cin, length = x.shape
    co = params["w1"].shape[0]
    n = b * length
    npad = _round_up(max(n, LANE), LANE)
    cin_p = _round_up(cin, SUBLANE)

    # NCL -> (C, B*L), zero-padded to (Cin_p, Npad)  (lane-dense layout)
    x2 = jnp.transpose(x, (1, 0, 2)).reshape(cin, n).astype(jnp.float32)
    x2p = jnp.zeros((cin_p, npad), jnp.float32).at[:cin, :n].set(x2)

    def col(v):                                     # (C,) -> (C, 1)
        return v.reshape(-1, 1).astype(jnp.float32)

    # conv1 weights (Co, Cin, 3) -> fused (Co, 3*Cin_p); column block k holds
    # W[:, :, k] (tap order d=-1, 0, +1), matching stack_taps row order.
    w1p = jnp.zeros((co, cin_p, 3), jnp.float32).at[:, :cin, :].set(
        params["w1"].astype(jnp.float32))
    w1f = jnp.transpose(w1p, (0, 2, 1)).reshape(co, 3 * cin_p)
    # resize 1x1 conv folded into the centre-tap block (centre block = plain x)
    wrp = jnp.zeros((co, 3 * cin_p), jnp.float32).at[:, cin_p:cin_p + cin].set(
        params["wr"][:, :, 0].astype(jnp.float32))
    w1r = jnp.concatenate([w1f, wrp], axis=0)       # (2Co, 3*Cin_p)

    # conv2 weights (Co, Co, 3) -> fused (Co, 3*Co)
    w2f = jnp.transpose(params["w2"].astype(jnp.float32),
                        (0, 2, 1)).reshape(co, 3 * co)

    # BN affine params: conv1-BN and resize-BN stacked to match w1r rows.
    g1r = jnp.concatenate([col(params["g1"]), col(params["gr"])], axis=0)
    be1r = jnp.concatenate([col(params["be1"]), col(params["ber"])], axis=0)

    # NOTE: conv biases (b1, b2, br) are intentionally omitted: training-mode
    # BatchNorm subtracts the per-channel mean, so they cancel exactly.
    kernel_args = (x2p, w1r, g1r, be1r, w2f, col(params["g2"]), col(params["be2"]))

    vmem = pl.BlockSpec(memory_space=pltpu.MemorySpace.VMEM)
    out2 = pl.pallas_call(
        functools.partial(basic_block_kernel, length, n),
        out_shape=jax.ShapeDtypeStruct((co, npad), jnp.float32),
        in_specs=[vmem] * len(kernel_args),
        out_specs=vmem,
    )(*kernel_args)

    # (Co, Npad) -> drop pad lanes -> NCL
    return jnp.transpose(out2[:, :n].reshape(co, b, length), (1, 0, 2))


# ------------------------- pure-JAX reference ------------------------------ #

def ref_forward(x, p):
    def conv3(h, w, bias):                           # h (B,Ci,L), w (Co,Ci,3)
        length = h.shape[-1]
        hp = jnp.pad(h, ((0, 0), (0, 0), (1, 1)))
        y = sum(jnp.einsum('oc,bcl->bol', w[:, :, k], hp[:, :, k:k + length])
                for k in range(3))
        return y + bias[None, :, None]

    def bn(h, g, be):
        mean = h.mean(axis=(0, 2), keepdims=True)
        var = ((h - mean) ** 2).mean(axis=(0, 2), keepdims=True)
        return (h - mean) / jnp.sqrt(var + EPS) * g[None, :, None] + be[None, :, None]

    def gelu(h):
        return 0.5 * h * (1.0 + jax.lax.erf(h * INV_SQRT2))

    h = gelu(bn(conv3(x, p["w1"], p["b1"]), p["g1"], p["be1"]))
    h = bn(conv3(h, p["w2"], p["b2"]), p["g2"], p["be2"])
    r = bn(jnp.einsum('oc,bcl->bol', p["wr"][:, :, 0], x) + p["br"][None, :, None],
           p["gr"], p["ber"])
    return gelu(h + r)


# ------------------------------- main -------------------------------------- #

def init_params(key):
    ks = jax.random.split(key, 12)
    f32 = jnp.float32
    return {
        "w1": 0.2 * jax.random.normal(ks[0], (CHANNEL, IN_CHANNEL, 3), f32),
        "b1": 0.1 * jax.random.normal(ks[1], (CHANNEL,), f32),
        "g1": 1.0 + 0.1 * jax.random.normal(ks[2], (CHANNEL,), f32),
        "be1": 0.1 * jax.random.normal(ks[3], (CHANNEL,), f32),
        "w2": 0.2 * jax.random.normal(ks[4], (CHANNEL, CHANNEL, 3), f32),
        "b2": 0.1 * jax.random.normal(ks[5], (CHANNEL,), f32),
        "g2": 1.0 + 0.1 * jax.random.normal(ks[6], (CHANNEL,), f32),
        "be2": 0.1 * jax.random.normal(ks[7], (CHANNEL,), f32),
        "wr": 0.2 * jax.random.normal(ks[8], (CHANNEL, IN_CHANNEL, 1), f32),
        "br": 0.1 * jax.random.normal(ks[9], (CHANNEL,), f32),
        "gr": 1.0 + 0.1 * jax.random.normal(ks[10], (CHANNEL,), f32),
        "ber": 0.1 * jax.random.normal(ks[11], (CHANNEL,), f32),
    }


if __name__ == "__main__":
    key = jax.random.PRNGKey(0)
    kx, kp = jax.random.split(key)
    x = jax.random.normal(kx, (BATCH, IN_CHANNEL, LENGTH), jnp.float32)
    params = init_params(kp)

    out = basic_block_forward(x, params)
    out = jax.block_until_ready(out)

    ref = ref_forward(x, params)
    assert out.shape == (BATCH, CHANNEL, LENGTH)
    assert jnp.allclose(out, ref, atol=5e-3, rtol=5e-3), (
        f"max abs err = {jnp.max(jnp.abs(out - ref))}")

    print("KERNEL_OK")
</pallas_src>

<mosaic_0001>
module attributes {stable_mosaic.version = 11 : i64} {
  func.func @basic_block_kernel(%arg0: memref<8x128xf32, #tpu.memory_space<vmem>>, %arg1: memref<16x24xf32, #tpu.memory_space<vmem>>, %arg2: memref<16x1xf32, #tpu.memory_space<vmem>>, %arg3: memref<16x1xf32, #tpu.memory_space<vmem>>, %arg4: memref<8x24xf32, #tpu.memory_space<vmem>>, %arg5: memref<8x1xf32, #tpu.memory_space<vmem>>, %arg6: memref<8x1xf32, #tpu.memory_space<vmem>>, %arg7: memref<8x128xf32, #tpu.memory_space<vmem>>) attributes {dimension_semantics = [], scalar_prefetch = 0 : i64, scratch_operands = 0 : i64, tpu.core_type = #tpu.core_type<tc>} {
    %c0 = arith.constant 0 : index
    %c0_0 = arith.constant 0 : index
    %0 = vector.load %arg0[%c0, %c0_0] : memref<8x128xf32, #tpu.memory_space<vmem>>, vector<8x128xf32>
    %1 = tpu.iota {dimensions = array<i32: 1>} : vector<1x128xi32>
    %c16_i32 = arith.constant 16 : i32
    %c0_i32 = arith.constant 0 : i32
    %2 = arith.cmpi eq, %c16_i32, %c0_i32 : i32
    %c1_i32 = arith.constant 1 : i32
    %3 = arith.select %2, %c1_i32, %c16_i32 : i32
    %4 = vector.broadcast %3 : i32 to vector<1x128xi32>
    %5 = arith.remsi %1, %4 : vector<1x128xi32>
    %c0_i32_1 = arith.constant 0 : i32
    %6 = vector.broadcast %c0_i32_1 : i32 to vector<1x128xi32>
    %7 = arith.cmpi ne, %5, %6 : vector<1x128xi32>
    %c0_i32_2 = arith.constant 0 : i32
    %8 = vector.broadcast %c0_i32_2 : i32 to vector<1x128xi32>
    %9 = arith.cmpi slt, %5, %8 : vector<1x128xi32>
    %c0_i32_3 = arith.constant 0 : i32
    %10 = arith.cmpi slt, %3, %c0_i32_3 : i32
    %11 = vector.broadcast %10 : i1 to vector<1x128xi1>
    %12 = vector.broadcast %11 : vector<1x128xi1> to vector<1x128xi1>
    %13 = arith.xori %9, %12 : vector<1x128xi1>
    %14 = arith.andi %13, %7 : vector<1x128xi1>
    %15 = vector.broadcast %3 : i32 to vector<1x128xi32>
    %16 = arith.addi %5, %15 : vector<1x128xi32>
    %17 = arith.select %14, %16, %5 : vector<1x128xi1>, vector<1x128xi32>
    %c32_i32 = arith.constant 32 : i32
    %18 = vector.broadcast %c32_i32 : i32 to vector<1x128xi32>
    %19 = arith.cmpi slt, %1, %18 : vector<1x128xi32>
    %c1_i32_4 = arith.constant 1 : i32
    %20 = vector.broadcast %c1_i32_4 : i32 to vector<1x128xi32>
    %21 = arith.cmpi sge, %17, %20 : vector<1x128xi32>
    %c15_i32 = arith.constant 15 : i32
    %22 = vector.broadcast %c15_i32 : i32 to vector<1x128xi32>
    %23 = arith.cmpi slt, %17, %22 : vector<1x128xi32>
    %c0_5 = arith.constant 0 : index
    %c0_6 = arith.constant 0 : index
    %24 = vector.load %arg1[%c0_5, %c0_6] : memref<16x24xf32, #tpu.memory_space<vmem>>, vector<16x24xf32>
    %c1_i32_7 = arith.constant 1 : i32
    %25 = tpu.dynamic_rotate %0 by %c1_i32_7 dim 1 : vector<8x128xf32>, i32 -> vector<8x128xf32>
    %cst = arith.constant 0.000000e+00 : f32
    %26 = vector.shape_cast %21 : vector<1x128xi1> to vector<1x128xi1>
    %27 = vector.broadcast %26 : vector<1x128xi1> to vector<8x128xi1>
    %28 = vector.broadcast %cst : f32 to vector<8x128xf32>
    %29 = arith.select %27, %25, %28 : vector<8x128xi1>, vector<8x128xf32>
    %c127_i32 = arith.constant 127 : i32
    %30 = tpu.dynamic_rotate %0 by %c127_i32 dim 1 : vector<8x128xf32>, i32 -> vector<8x128xf32>
    %cst_8 = arith.constant 0.000000e+00 : f32
    %31 = vector.shape_cast %23 : vector<1x128xi1> to vector<1x128xi1>
    %32 = vector.broadcast %31 : vector<1x128xi1> to vector<8x128xi1>
    %33 = vector.broadcast %cst_8 : f32 to vector<8x128xf32>
    %34 = arith.select %32, %30, %33 : vector<8x128xi1>, vector<8x128xf32>
    %35 = tpu.concatenate %29, %0, %34 in 0 : vector<8x128xf32>, vector<8x128xf32>, vector<8x128xf32> -> vector<24x128xf32>
    %cst_9 = arith.constant dense<0.000000e+00> : vector<16x128xf32>
    %36 = tpu.matmul %24, %35, %cst_9 {dimension_numbers = #tpu.dot_dimension_numbers<[1], [0], [0], [1], [0, 0, 1, 1], [], []>} : vector<16x24xf32>, vector<24x128xf32>, vector<16x128xf32> -> vector<16x128xf32>
    %c0_10 = arith.constant 0 : index
    %c0_11 = arith.constant 0 : index
    %37 = vector.load %arg2[%c0_10, %c0_11] : memref<16x1xf32, #tpu.memory_space<vmem>>, vector<16x1xf32>
    %c0_12 = arith.constant 0 : index
    %c0_13 = arith.constant 0 : index
    %38 = vector.load %arg3[%c0_12, %c0_13] : memref<16x1xf32, #tpu.memory_space<vmem>>, vector<16x1xf32>
    %cst_14 = arith.constant 0.000000e+00 : f32
    %39 = vector.shape_cast %19 : vector<1x128xi1> to vector<1x128xi1>
    %40 = vector.broadcast %39 : vector<1x128xi1> to vector<16x128xi1>
    %41 = vector.broadcast %cst_14 : f32 to vector<16x128xf32>
    %42 = arith.select %40, %36, %41 : vector<16x128xi1>, vector<16x128xf32>
    %43 = arith.mulf %42, %42 : vector<16x128xf32>
    %44 = tpu.concatenate %42, %43 in 0 : vector<16x128xf32>, vector<16x128xf32> -> vector<32x128xf32>
    %cst_15 = arith.constant dense<0.000000e+00> : vector<32xf32>
    %45 = vector.multi_reduction <add>, %44, %cst_15 [1] : vector<32x128xf32> to vector<32xf32>
    %46 = vector.shape_cast %45 : vector<32xf32> to vector<32x1xf32>
    %47 = vector.extract_strided_slice %46 {offsets = [0, 0], sizes = [16, 1], strides = [1, 1]} : vector<32x1xf32> to vector<16x1xf32>
    %cst_16 = arith.constant 3.125000e-02 : f32
    %48 = vector.broadcast %cst_16 : f32 to vector<16x1xf32>
    %49 = arith.mulf %47, %48 : vector<16x1xf32>
    %50 = vector.extract_strided_slice %46 {offsets = [16, 0], sizes = [16, 1], strides = [1, 1]} : vector<32x1xf32> to vector<16x1xf32>
    %cst_17 = arith.constant 3.125000e-02 : f32
    %51 = vector.broadcast %cst_17 : f32 to vector<16x1xf32>
    %52 = arith.mulf %50, %51 : vector<16x1xf32>
    %53 = arith.mulf %49, %49 : vector<16x1xf32>
    %54 = arith.subf %52, %53 : vector<16x1xf32>
    %55 = vector.broadcast %49 : vector<16x1xf32> to vector<16x128xf32>
    %56 = arith.subf %36, %55 : vector<16x128xf32>
    %cst_18 = arith.constant 9.99999974E-6 : f32
    %57 = vector.broadcast %cst_18 : f32 to vector<16x1xf32>
    %58 = arith.addf %54, %57 : vector<16x1xf32>
    %59 = math.rsqrt %58 : vector<16x1xf32>
    %60 = vector.broadcast %59 : vector<16x1xf32> to vector<16x128xf32>
    %61 = arith.mulf %56, %60 : vector<16x128xf32>
    %62 = vector.broadcast %37 : vector<16x1xf32> to vector<16x128xf32>
    %63 = arith.mulf %61, %62 : vector<16x128xf32>
    %64 = vector.broadcast %38 : vector<16x1xf32> to vector<16x128xf32>
    %65 = arith.addf %63, %64 : vector<16x128xf32>
    %66 = vector.extract_strided_slice %65 {offsets = [0, 0], sizes = [8, 128], strides = [1, 1]} : vector<16x128xf32> to vector<8x128xf32>
    %cst_19 = arith.constant 5.000000e-01 : f32
    %67 = vector.broadcast %cst_19 : f32 to vector<8x128xf32>
    %68 = arith.mulf %67, %66 : vector<8x128xf32>
    %cst_20 = arith.constant 0.707106769 : f32
    %69 = vector.broadcast %cst_20 : f32 to vector<8x128xf32>
    %70 = arith.mulf %66, %69 : vector<8x128xf32>
    %71 = math.erf %70 : vector<8x128xf32>
    %cst_21 = arith.constant 1.000000e+00 : f32
    %72 = vector.broadcast %cst_21 : f32 to vector<8x128xf32>
    %73 = arith.addf %72, %71 : vector<8x128xf32>
    %74 = arith.mulf %68, %73 : vector<8x128xf32>
    %75 = vector.extract_strided_slice %65 {offsets = [8, 0], sizes = [8, 128], strides = [1, 1]} : vector<16x128xf32> to vector<8x128xf32>
    %c0_22 = arith.constant 0 : index
    %c0_23 = arith.constant 0 : index
    %76 = vector.load %arg4[%c0_22, %c0_23] : memref<8x24xf32, #tpu.memory_space<vmem>>, vector<8x24xf32>
    %c1_i32_24 = arith.constant 1 : i32
    %77 = tpu.dynamic_rotate %74 by %c1_i32_24 dim 1 : vector<8x128xf32>, i32 -> vector<8x128xf32>
    %cst_25 = arith.constant 0.000000e+00 : f32
    %78 = vector.shape_cast %21 : vector<1x128xi1> to vector<1x128xi1>
    %79 = vector.broadcast %78 : vector<1x128xi1> to vector<8x128xi1>
    %80 = vector.broadcast %cst_25 : f32 to vector<8x128xf32>
    %81 = arith.select %79, %77, %80 : vector<8x128xi1>, vector<8x128xf32>
    %c127_i32_26 = arith.constant 127 : i32
    %82 = tpu.dynamic_rotate %74 by %c127_i32_26 dim 1 : vector<8x128xf32>, i32 -> vector<8x128xf32>
    %cst_27 = arith.constant 0.000000e+00 : f32
    %83 = vector.shape_cast %23 : vector<1x128xi1> to vector<1x128xi1>
    %84 = vector.broadcast %83 : vector<1x128xi1> to vector<8x128xi1>
    %85 = vector.broadcast %cst_27 : f32 to vector<8x128xf32>
    %86 = arith.select %84, %82, %85 : vector<8x128xi1>, vector<8x128xf32>
    %87 = tpu.concatenate %81, %74, %86 in 0 : vector<8x128xf32>, vector<8x128xf32>, vector<8x128xf32> -> vector<24x128xf32>
    %cst_28 = arith.constant dense<0.000000e+00> : vector<8x128xf32>
    %88 = tpu.matmul %76, %87, %cst_28 {dimension_numbers = #tpu.dot_dimension_numbers<[1], [0], [0], [1], [0, 0, 1, 1], [], []>} : vector<8x24xf32>, vector<24x128xf32>, vector<8x128xf32> -> vector<8x128xf32>
    %c0_29 = arith.constant 0 : index
    %c0_30 = arith.constant 0 : index
    %89 = vector.load %arg5[%c0_29, %c0_30] : memref<8x1xf32, #tpu.memory_space<vmem>>, vector<8x1xf32>
    %c0_31 = arith.constant 0 : index
    %c0_32 = arith.constant 0 : index
    %90 = vector.load %arg6[%c0_31, %c0_32] : memref<8x1xf32, #tpu.memory_space<vmem>>, vector<8x1xf32>
    %cst_33 = arith.constant 0.000000e+00 : f32
    %91 = vector.shape_cast %19 : vector<1x128xi1> to vector<1x128xi1>
    %92 = vector.broadcast %91 : vector<1x128xi1> to vector<8x128xi1>
    %93 = vector.broadcast %cst_33 : f32 to vector<8x128xf32>
    %94 = arith.select %92, %88, %93 : vector<8x128xi1>, vector<8x128xf32>
    %95 = arith.mulf %94, %94 : vector<8x128xf32>
    %96 = tpu.concatenate %94, %95 in 0 : vector<8x128xf32>, vector<8x128xf32> -> vector<16x128xf32>
    %cst_34 = arith.constant dense<0.000000e+00> : vector<16xf32>
    %97 = vector.multi_reduction <add>, %96, %cst_34 [1] : vector<16x128xf32> to vector<16xf32>
    %98 = vector.shape_cast %97 : vector<16xf32> to vector<16x1xf32>
    %99 = vector.extract_strided_slice %98 {offsets = [0, 0], sizes = [8, 1], strides = [1, 1]} : vector<16x1xf32> to vector<8x1xf32>
    %cst_35 = arith.constant 3.125000e-02 : f32
    %100 = vector.broadcast %cst_35 : f32 to vector<8x1xf32>
    %101 = arith.mulf %99, %100 : vector<8x1xf32>
    %102 = vector.extract_strided_slice %98 {offsets = [8, 0], sizes = [8, 1], strides = [1, 1]} : vector<16x1xf32> to vector<8x1xf32>
    %cst_36 = arith.constant 3.125000e-02 : f32
    %103 = vector.broadcast %cst_36 : f32 to vector<8x1xf32>
    %104 = arith.mulf %102, %103 : vector<8x1xf32>
    %105 = arith.mulf %101, %101 : vector<8x1xf32>
    %106 = arith.subf %104, %105 : vector<8x1xf32>
    %107 = vector.broadcast %101 : vector<8x1xf32> to vector<8x128xf32>
    %108 = arith.subf %88, %107 : vector<8x128xf32>
    %cst_37 = arith.constant 9.99999974E-6 : f32
    %109 = vector.broadcast %cst_37 : f32 to vector<8x1xf32>
    %110 = arith.addf %106, %109 : vector<8x1xf32>
    %111 = math.rsqrt %110 : vector<8x1xf32>
    %112 = vector.broadcast %111 : vector<8x1xf32> to vector<8x128xf32>
    %113 = arith.mulf %108, %112 : vector<8x128xf32>
    %114 = vector.broadcast %89 : vector<8x1xf32> to vector<8x128xf32>
    %115 = arith.mulf %113, %114 : vector<8x128xf32>
    %116 = vector.broadcast %90 : vector<8x1xf32> to vector<8x128xf32>
    %117 = arith.addf %115, %116 : vector<8x128xf32>
    %118 = arith.addf %117, %75 : vector<8x128xf32>
    %cst_38 = arith.constant 5.000000e-01 : f32
    %119 = vector.broadcast %cst_38 : f32 to vector<8x128xf32>
    %120 = arith.mulf %119, %118 : vector<8x128xf32>
    %cst_39 = arith.constant 0.707106769 : f32
    %121 = vector.broadcast %cst_39 : f32 to vector<8x128xf32>
    %122 = arith.mulf %118, %121 : vector<8x128xf32>
    %123 = math.erf %122 : vector<8x128xf32>
    %cst_40 = arith.constant 1.000000e+00 : f32
    %124 = vector.broadcast %cst_40 : f32 to vector<8x128xf32>
    %125 = arith.addf %124, %123 : vector<8x128xf32>
    %126 = arith.mulf %120, %125 : vector<8x128xf32>
    %c0_41 = arith.constant 0 : index
    %c0_42 = arith.constant 0 : index
    %127 = vector.load %arg7[%c0_41, %c0_42] : memref<8x128xf32, #tpu.memory_space<vmem>>, vector<8x128xf32>
    tpu.vector_store %arg7[%c0_41, %c0_42], %126 {strides = array<i32>} : memref<8x128xf32, #tpu.memory_space<vmem>>, vector<8x128xf32>,
    return
  }
}

</mosaic_0001>

<bundles_post_ra>
// kernel: tpu_custom_call.1
= control target key start
LH: loop header
LB: loop body
LE: loop exit
PB: predicated region body
PF: predicated region fallthrough
CT: control target
= control target key end

     0   :  { %vm57_vm0 = vcmask 195584   ;;  %s419_s28 = smov 1   ;;  %s550_s0 = inlined_call_operand.vmem [shape: f32[8,128], index: 0, kind: input, shape index: {}]   ;;  %s551_s1 = inlined_call_operand.vmem [shape: f32[16,24], index: 1, kind: input, shape index: {}]   ;;  %s552_s2 = inlined_call_operand.vmem [shape: f32[16,1], index: 2, kind: input, shape index: {}]   ;;  %s553_s3 = inlined_call_operand.vmem [shape: f32[16,1], index: 3, kind: input, shape index: {}]   ;;  %s554_s4 = inlined_call_operand.vmem [shape: f32[8,24], index: 4, kind: input, shape index: {}]   ;;  %s555_s5 = inlined_call_operand.vmem [shape: f32[8,1], index: 5, kind: input, shape index: {}]   ;;  %s556_s6 = inlined_call_operand.vmem [shape: f32[8,1], index: 6, kind: input, shape index: {}]   ;;  %s557_s7 = inlined_call_operand.hbm [shape: f32[8,128], index: 7, kind: output, shape index: {}]  }
   0x1   :  { %v27_v0 = vld [vmem:[%s550_s0] sm:$0xff] }
   0x2   :  { %v45_v1 = vld [vmem:[%s551_s1] sm:$0xff]  ;;  %47 = vrot.lane.b32.xlu0 %v27_v0, %s419_s28 }
   0x3   :  { %353 = vmatprep.mubr.msk.f32.mxu0 %vm57_vm0, %v45_v1 }
   0x4   :  { %12 = vsyncpa [#allocation3], 0  ;;  %s420_s29 = smov 127   ;;  %v28_v2 = vlaneseq  ;;  %vm421_vm2 = vmmov 1   ;;  %v46_v10 = vld [vmem:[%s551_s1 + $0x8] sm:$0xff]  ;;  %v422_v11 = vmov 0  }
   0x5   :  { %384 = vset.pattern.permute.xlu1 %v422_v11  ;;  %383 = vset.pattern.permute.xlu0 %v422_v11  ;;  %v139_v12 = vld [vmem:[%s552_s2] sm:$0xff]  ;;  %v140_v18 = vld [vmem:[%s552_s2 + $0x8] sm:$0xff]  ;;  %v423_v34 = vmov 0.0|0.0   ;;  %vm424_vm6 = vmmov 0   ;;  %v425_v35 = vmov 0.0  }
   0x6   :  { %52 = vrot.lane.b32.xlu0 %v27_v0, %s420_s29  ;;  %v476_v3 = vand.u32 127, %v28_v2  ;;  %v141_v17 = vld [vmem:[%s553_s3] sm:$0xff]  ;;  %371 = vmatprep.subr.bf16.mxu1 %v423_v34  ;;  %v142_v50 = vld [vmem:[%s553_s3 + $0x8] sm:$0xff]  ;;  %s426_s3 = smov [#allocation2]  }
   0x7   :  { %362 = vmatprep.mubr.msk.f32.mxu1 %vm424_vm6, %v425_v35  ;;  %v202_v44 = vld [vmem:[%s554_s4] sm:$0xff] }
   0x8   :  { %v34_v4 = vand.u32 15, %v476_v3  ;;  %vm42_vm5 = vcmp.lt.s32.totalorder %v476_v3, 32  ;;  %v283_v51 = vld [vmem:[%s556_s6] sm:$0xff] }
   0x9   :  { %v282_v52 = vld [vmem:[%s555_s5] sm:$0xff]  ;;  %s323_s5 = sshll.u32 %s426_s3, 4  ;;  %s324_s5 = int_to_ptr.vmem [resolvable:$true] %s323_s5 }
   0xa   :  { %vm43_vm1 = vcmp.ge.s32.totalorder %v34_v4, 1  ;;  %vm483_vm4 = vcmp.lt.s32.totalorder %v34_v4, 15  ;;  %175 = vperm.xlu0 %383, %v139_v12   ;;  %s395_s6 = scalar_lea.vmem %s324_s5, 128  ;;  %p400_p1 = scmp.lt.s32.totalorder %s324_s5, %s324_s5 }
   0xb   :  { %vm479_vm3 = vmpackc.low %vm421_vm2, %vm43_vm1  ;;  %p396_p0 = scmp.ne.s32.totalorder %s324_s5, %s395_s6  ;;  %p401_p2 = scmp.lt.s32.totalorder %s395_s6, %s395_s6 }
   0xd   :  { %p402_p3 = por %p401_p2, %p400_p1 }
   0xf   :  { %p403_p4 = pnand %p402_p3, %p396_p0 }
  0x74   :  { %v48_v5 = vpop.permute.xlu0 %47 }
  0x75   :  { %v365_v7 = vpack.c.bf16 %v27_v0, %v48_v5 }
  0x77   :  { %367 = vmatprep.subr.msk.bf16.mxu0 %vm479_vm3, %v365_v7 }
  0x78   :  { %370 = vmatpush3.bf16.msk.msra.mxu0 %vm479_vm3, %v365_v7  ;;  %v53_v9 = vpop.permute.xlu0 %52 }
  0x79   :  { %351 = vmatprep.subr.msk.mxu0 %vm483_vm4, %v53_v9 }
  0x7c   :  { %352 = vmatpush3.msk.msra.mxu0 %vm483_vm4, %v53_v9 }
  0x7d   :  { %354 = vmatmul.mubr.msk.f32.vlgmr.msra.gmra.mrb[0].mxu0 %vm57_vm0, %v46_v10 }
  0x89   :  { %v176_v28 = vpop.permute.xlu0 %175 }
 0x150   :  { %v503_v13 = vpop.f32.mrb[0].mxu0 }
 0x151   :  { %v130_v14 = vpop.f32.mrb[1].mxu0  ;;  %v146_v40 = vsel %vm42_vm5, %v503_v13, 0.0 }
 0x152   :  { %v145_v15 = vsel %vm42_vm5, %v130_v14, 0.0  ;;  %v148_v41 = vmul.f32 %v146_v40, %v146_v40 }
 0x153   :  { %149 = vadd.xlane.f32.xlu1 %v145_v15  ;;  %v147_v16 = vmul.f32 %v145_v15, %v145_v15 }
 0x157   :  { %153 = vadd.xlane.f32.xlu1 %v147_v16 }
 0x168   :  { %187 = vperm.xlu1 %384, %v141_v17  }
 0x16c   :  { %180 = vperm.xlu1 %384, %v140_v18  }
 0x1e0   :  { %v150_v19 = vpop.xlane.xlu1 %149 }
 0x1e1   :  { %v157_v20 = vmul.f32 0.03125, %v150_v19 }
 0x1e3   :  { %v161_v22 = vmul.f32 %v157_v20, %v157_v20  ;;  %v165_v26 = vsub.f32 %v130_v14, %v157_v20 }
 0x1e4   :  { %v154_v21 = vpop.xlane.xlu1 %153 }
 0x1e5   :  { %v159_v23 = vmul.f32 0.03125, %v154_v21 }
 0x1e7   :  { %v163_v24 = vsub.f32 %v159_v23, %v161_v22 }
 0x1e8   :  { %v188_v31 = vpop.permute.xlu1 %187 }
 0x1e9   :  { %v167_v25 = vadd.f32 1e-05, %v163_v24 }
 0x1eb   :  { %385 = vrsqrt.f32 %v167_v25 }
 0x1ec   :  { %v181_v58 = vpop.permute.xlu1 %180 }
 0x1f5   :  { %v386_v27 = vpop.eup %385 }
 0x1f6   :  { %v171_v29 = vmul.f32 %v386_v27, %v165_v26 }
 0x1f8   :  { %v183_v30 = vmul.f32 %v176_v28, %v171_v29 }
 0x1fa   :  { %v195_v32 = vadd.f32 %v188_v31, %v183_v30 }
 0x1fc   :  { %v198_v33 = vmul.f32 0.70710677, %v195_v32  ;;  %v197_v37 = vmul.f32 0.5, %v195_v32 }
 0x1fe   :  { %387 = verf.f32 %v198_v33 }
 0x208   :  { %v388_v36 = vpop.eup %387 }
 0x209   :  { %v200_v38 = vadd.f32 1.0, %v388_v36 }
 0x20b   :  { %v201_v39 = vmul.f32 %v200_v38, %v197_v37 }
 0x20d   :  { %203 = vrot.lane.b32.xlu0 %v201_v39, %s419_s28 }
 0x211   :  { %206 = vrot.lane.b32.xlu0 %v201_v39, %s420_s29 }
 0x230   :  { %151 = vadd.xlane.f32.xlu0 %v146_v40 }
 0x234   :  { %155 = vadd.xlane.f32.xlu0 %v148_v41 }
 0x27f   :  { %v204_v42 = vpop.permute.xlu0 %203 }
 0x280   :  { %v372_v43 = vpack.c.bf16 %v201_v39, %v204_v42 }
 0x282   :  { %374 = vmatpush3.bf16.msk.msra.mxu1 %vm479_vm3, %v372_v43 }
 0x283   :  { %360 = vmatprep.subr.mxu1 %v425_v35  ;;  %v207_v45 = vpop.permute.xlu0 %206 }
 0x286   :  { %361 = vmatpush3.msk.msra.mxu1 %vm483_vm4, %v207_v45 }
 0x287   :  { %363 = vmatmul.mubr.msk.f32.vlgmr.msra.gmra.mrb[0].mxu1 %vm57_vm0, %v202_v44 }
 0x2bd   :  { %v152_v53 = vpop.xlane.xlu0 %151 }
 0x2be   :  { %v158_v55 = vmul.f32 0.03125, %v152_v53 }
 0x2c0   :  { %v162_v57 = vmul.f32 %v158_v55, %v158_v55  ;;  %v166_v5 = vsub.f32 %v503_v13, %v158_v55 }
 0x2c1   :  { %v156_v54 = vpop.xlane.xlu0 %155 }
 0x2c2   :  { %v160_v56 = vmul.f32 0.03125, %v156_v54 }
 0x2c4   :  { %v164_v59 = vsub.f32 %v160_v56, %v162_v57 }
 0x2c6   :  { %v168_v61 = vadd.f32 1e-05, %v164_v59 }
 0x2c8   :  { %389 = vrsqrt.f32 %v168_v61 }
 0x2d2   :  { %v390_v4 = vpop.eup %389 }
 0x2d3   :  { %v172_v8 = vmul.f32 %v390_v4, %v166_v5 }
 0x2d5   :  { %v184_v12 = vmul.f32 %v181_v58, %v172_v8 }
 0x35a   :  { %v278_v46 = vpop.f32.mrb[0].mxu1 }
 0x35b   :  { %v364_v47 = vpop.f32.mrb[1].mxu1  ;;  %v284_v48 = vsel %vm42_vm5, %v278_v46, 0.0 }
 0x35c   :  { %286 = vadd.xlane.f32.xlu1 %v284_v48  ;;  %v285_v49 = vmul.f32 %v284_v48, %v284_v48 }
 0x35e   :  { %288 = vadd.xlane.f32.xlu0 %v285_v49 }
 0x36d   :  { %192 = vperm.xlu1 %384, %v142_v50  }
 0x371   :  { %306 = vperm.xlu1 %384, %v283_v51  }
 0x374   :  { %300 = vperm.xlu0 %383, %v282_v52  }
 0x3e9   :  { %v287_v60 = vpop.xlane.xlu1 %286 }
 0x3ea   :  { %v290_v62 = vmul.f32 0.03125, %v287_v60 }
 0x3eb   :  { %v289_v63 = vpop.xlane.xlu0 %288 }
 0x3ec   :  { %v292_v0 = vmul.f32 %v290_v62, %v290_v62  ;;  %v291_v1 = vmul.f32 0.03125, %v289_v63  ;;  %v294_v7 = vsub.f32 %v278_v46, %v290_v62 }
 0x3ed   :  { %v193_v6 = vpop.permute.xlu1 %192 }
 0x3ee   :  { %v293_v2 = vsub.f32 %v291_v1, %v292_v0  ;;  %v196_v16 = vadd.f32 %v193_v6, %v184_v12 }
 0x3f0   :  { %v295_v3 = vadd.f32 1e-05, %v293_v2 }
 0x3f1   :  { %v307_v15 = vpop.permute.xlu1 %306 }
 0x3f2   :  { %391 = vrsqrt.f32 %v295_v3 }
 0x3f3   :  { %v301_v11 = vpop.permute.xlu0 %300 }
 0x3fc   :  { %v392_v9 = vpop.eup %391 }
 0x3fd   :  { %v297_v10 = vmul.f32 %v392_v9, %v294_v7 }
 0x3ff   :  { %v303_v14 = vmul.f32 %v301_v11, %v297_v10 }
 0x401   :  { %v309_v17 = vadd.f32 %v307_v15, %v303_v14 }
 0x403   :  { %v310_v18 = vadd.f32 %v309_v17, %v196_v16 }
 0x405   :  { %v312_v19 = vmul.f32 0.70710677, %v310_v18  ;;  %v311_v21 = vmul.f32 0.5, %v310_v18 }
 0x407   :  { %393 = verf.f32 %v312_v19 }
 0x411   :  { %v394_v20 = vpop.eup %393 }
 0x412   :  { %v314_v22 = vadd.f32 1.0, %v394_v20 }
 0x414   :  { %v315_v13 = vmul.f32 %v314_v22, %v311_v21 }
 0x416   :  { %316 = vst [vmem:[#allocation2] sm:$0xff] %v315_v13 }
 0x417   :  { %406 = shalt.err (!%p403_p4)
}
 0x418   :  { %s407_s21 = scalar_lea.hbm %s557_s7, 128 }
 0x419   :  { %p408_p5 = scmp.ne.s32.totalorder %s557_s7, %s407_s21  ;;  %p411_p6 = scmp.lt.u32.totalorder %s407_s21, %s557_s7 }
 0x41b   :  { %p413_p7 = pnand %p411_p6, %p408_p5 }
 0x41d   :  { %416 = shalt.err (!%p413_p7)
}
 0x41e   :  { %326 = dma.vmem_to_hbm [thread:$0]  %s324_s5, 128, %s557_s7, [#allocation3]  }
 0x41f   :  { %417 = dma.done.wait [#allocation3], 128  }
 0x420   :  { %418 = vsyncadd [#allocation3], 4294967168 }
 0x421   :  { %330 = vsyncpa [#allocation3], 1 }

</bundles_post_ra>
